<compile_context>
chip_gen: v5e
topology: v5e:2x2
jax: 0.10.0
libtpu: 0.0.40
codegen_flags: <defaults>
</compile_context>

<pallas_src>
import functools

import jax
import jax.numpy as jnp
from jax.experimental import pallas as pl
from jax.experimental.pallas import tpu as pltpu

_LANES = 128            # lane width of a vreg
_MAX_BLOCK_ROWS = 256   # 256 x 128 = 32768 boxes (~128 KiB/coord) per grid step


def _round_up(x, m):
    return (x + m - 1) // m * m


def _iou_loss_kernel(px_ref, py_ref, pw_ref, ph_ref,
                     tx_ref, ty_ref, tw_ref, th_ref,
                     loss_ref, *, loss_type):
    # All refs are dense (block_rows, 128) f32 VMEM tiles.
    px, py, pw, ph = px_ref[...], py_ref[...], pw_ref[...], ph_ref[...]
    tx, ty, tw, th = tx_ref[...], ty_ref[...], tw_ref[...], th_ref[...]

    # Hoisted half-extents / box edges (reused by all branches).
    p_hw = pw * 0.5
    p_hh = ph * 0.5
    t_hw = tw * 0.5
    t_hh = th * 0.5
    p_l, p_r = px - p_hw, px + p_hw
    p_t, p_b = py - p_hh, py + p_hh
    t_l, t_r = tx - t_hw, tx + t_hw
    t_t, t_b = ty - t_hh, ty + t_hh

    # Intersection box.
    tl_x = jnp.maximum(p_l, t_l)
    tl_y = jnp.maximum(p_t, t_t)
    br_x = jnp.minimum(p_r, t_r)
    br_y = jnp.minimum(p_b, t_b)

    area_p = pw * ph
    area_g = tw * th
    # Clamped widths == (width * height) * en mask, with fewer VALU ops.
    area_i = jnp.maximum(br_x - tl_x, 0.0) * jnp.maximum(br_y - tl_y, 0.0)
    iou = area_i / (area_p + area_g - area_i + 1e-16)

    if loss_type == "iou":
        loss = 1.0 - iou * iou
    elif loss_type == "giou":
        c_dx = jnp.maximum(p_r, t_r) - jnp.minimum(p_l, t_l)
        c_dy = jnp.maximum(p_b, t_b) - jnp.minimum(p_t, t_t)
        area_c = c_dx * c_dy
        giou = iou - (area_c - area_i) / jnp.maximum(area_c, 1e-16)
        loss = 1.0 - jnp.clip(giou, -1.0, 1.0)
    elif loss_type == "eiou":
        c_dx = jnp.maximum(p_r, t_r) - jnp.minimum(p_l, t_l)
        c_dy = jnp.maximum(p_b, t_b) - jnp.minimum(p_t, t_t)
        c_w = c_dx * c_dx                      # == (c_tl_x - c_br_x)^2
        c_h = c_dy * c_dy                      # == (c_tl_y - c_br_y)^2
        convex_dis = c_w + c_h
        center_dis = (px - tx) * (px - tx) + (py - ty) * (py - ty)
        dis_w = (pw - tw) * (pw - tw)
        dis_h = (ph - th) * (ph - th)
        eiou = (iou
                - center_dis / jnp.maximum(convex_dis, 1e-16)
                - dis_w / jnp.maximum(c_w, 1e-16)
                - dis_h / jnp.maximum(c_h, 1e-16))
        loss = 1.0 - jnp.clip(eiou, -1.0, 1.0)
    else:
        raise ValueError(f"unknown loss_type: {loss_type}")

    loss_ref[...] = loss


def iou_loss(pred, target, *, reduction="none", loss_type="iou"):
    """JAX/Pallas equivalent of IOUloss.forward."""
    assert pred.shape[0] == target.shape[0]
    if loss_type not in ("iou", "giou", "eiou"):
        raise ValueError(f"unknown loss_type: {loss_type}")

    pred = jnp.asarray(pred, jnp.float32).reshape(-1, 4)
    target = jnp.asarray(target, jnp.float32).reshape(-1, 4)
    n = pred.shape[0]

    rows = pl.cdiv(n, _LANES)
    block_rows = _MAX_BLOCK_ROWS if rows >= _MAX_BLOCK_ROWS else _round_up(rows, 8)
    rows_padded = _round_up(rows, block_rows)
    n_pad = rows_padded * _LANES

    def slab(a, col):
        # column slice -> zero pad -> (rows_padded, 128) dense slab.
        # Zero padding is numerically safe (all denominators clamped; padded
        # losses are sliced off below).
        c = a[:, col]
        if n_pad != n:
            c = jnp.pad(c, (0, n_pad - n))
        return c.reshape(rows_padded, _LANES)

    coords = [slab(pred, i) for i in range(4)] + [slab(target, i) for i in range(4)]

    kernel = functools.partial(_iou_loss_kernel, loss_type=loss_type)
    block_spec = pl.BlockSpec((block_rows, _LANES), lambda i: (i, 0))

    loss2d = pl.pallas_call(
        kernel,
        out_shape=jax.ShapeDtypeStruct((rows_padded, _LANES), jnp.float32),
        grid_spec=pltpu.PrefetchScalarGridSpec(
            num_scalar_prefetch=0,
            grid=(rows_padded // block_rows,),
            in_specs=[block_spec] * 8,
            out_specs=block_spec,
        ),
        compiler_params=pltpu.CompilerParams(
            dimension_semantics=("parallel",)),
    )(*coords)

    loss = loss2d.reshape(-1)[:n]
    # TODO(synk): mean/sum could be fused in-kernel with a masked accumulator;
    # kept in the wrapper since the reduction input is tiny.
    if reduction == "mean":
        loss = loss.mean()
    elif reduction == "sum":
        loss = loss.sum()
    return loss


def _iou_loss_ref(pred, target, *, reduction="none", loss_type="iou"):
    """Pure-JAX reference (mirrors the PyTorch module)."""
    pred = jnp.asarray(pred, jnp.float32).reshape(-1, 4)
    target = jnp.asarray(target, jnp.float32).reshape(-1, 4)
    tl = jnp.maximum(pred[:, :2] - pred[:, 2:] / 2, target[:, :2] - target[:, 2:] / 2)
    br = jnp.minimum(pred[:, :2] + pred[:, 2:] / 2, target[:, :2] + target[:, 2:] / 2)
    area_p = jnp.prod(pred[:, 2:], 1)
    area_g = jnp.prod(target[:, 2:], 1)
    en = jnp.prod((tl < br).astype(jnp.float32), axis=1)
    area_i = jnp.prod(br - tl, 1) * en
    iou = area_i / (area_p + area_g - area_i + 1e-16)
    if loss_type == "iou":
        loss = 1 - iou ** 2
    elif loss_type == "giou":
        c_tl = jnp.minimum(pred[:, :2] - pred[:, 2:] / 2, target[:, :2] - target[:, 2:] / 2)
        c_br = jnp.maximum(pred[:, :2] + pred[:, 2:] / 2, target[:, :2] + target[:, 2:] / 2)
        area_c = jnp.prod(c_br - c_tl, 1)
        giou = iou - (area_c - area_i) / jnp.maximum(area_c, 1e-16)
        loss = 1 - jnp.clip(giou, -1.0, 1.0)
    elif loss_type == "eiou":
        c_tl = jnp.minimum(pred[:, :2] - pred[:, 2:] / 2, target[:, :2] - target[:, 2:] / 2)
        c_br = jnp.maximum(pred[:, :2] + pred[:, 2:] / 2, target[:, :2] + target[:, 2:] / 2)
        convex_dis = (c_br[:, 0] - c_tl[:, 0]) ** 2 + (c_br[:, 1] - c_tl[:, 1]) ** 2
        center_dis = (pred[:, 0] - target[:, 0]) ** 2 + (pred[:, 1] - target[:, 1]) ** 2
        dis_w = (pred[:, 2] - target[:, 2]) ** 2
        dis_h = (pred[:, 3] - target[:, 3]) ** 2
        c_w = (c_tl[:, 0] - c_br[:, 0]) ** 2
        c_h = (c_tl[:, 1] - c_br[:, 1]) ** 2
        eiou = (iou - center_dis / jnp.maximum(convex_dis, 1e-16)
                - dis_w / jnp.maximum(c_w, 1e-16)
                - dis_h / jnp.maximum(c_h, 1e-16))
        loss = 1 - jnp.clip(eiou, -1.0, 1.0)
    if reduction == "mean":
        loss = loss.mean()
    elif reduction == "sum":
        loss = loss.sum()
    return loss


if __name__ == "__main__":
    key = jax.random.PRNGKey(0)
    ok = True
    for N in (8, 1000):  # small + one that exercises padding across lane rows
        k1, k2, k3, k4 = jax.random.split(jax.random.fold_in(key, N), 4)
        pred_xy = jax.random.uniform(k1, (N, 2), jnp.float32, 0.0, 16.0)
        pred_wh = jax.random.uniform(k2, (N, 2), jnp.float32, 1.0, 8.0)
        tgt_xy = jax.random.uniform(k3, (N, 2), jnp.float32, 0.0, 16.0)
        tgt_wh = jax.random.uniform(k4, (N, 2), jnp.float32, 1.0, 8.0)
        pred = jnp.concatenate([pred_xy, pred_wh], axis=1)
        target = jnp.concatenate([tgt_xy, tgt_wh], axis=1)

        for loss_type in ("iou", "giou", "eiou"):
            for reduction in ("none", "mean", "sum"):
                out = iou_loss(pred, target, reduction=reduction, loss_type=loss_type)
                out = jax.block_until_ready(out)
                ref = _iou_loss_ref(pred, target, reduction=reduction, loss_type=loss_type)
                if not jnp.allclose(out, ref, atol=1e-5, rtol=1e-5):
                    ok = False
                    print(f"MISMATCH N={N} loss_type={loss_type} reduction={reduction}")
    if ok:
        print("KERNEL_OK")
</pallas_src>

<mosaic_0001>
module attributes {stable_mosaic.version = 11 : i64} {
  func.func @_iou_loss_kernel(%arg0: i32, %arg1: memref<8x128xf32, #tpu.memory_space<vmem>>, %arg2: memref<8x128xf32, #tpu.memory_space<vmem>>, %arg3: memref<8x128xf32, #tpu.memory_space<vmem>>, %arg4: memref<8x128xf32, #tpu.memory_space<vmem>>, %arg5: memref<8x128xf32, #tpu.memory_space<vmem>>, %arg6: memref<8x128xf32, #tpu.memory_space<vmem>>, %arg7: memref<8x128xf32, #tpu.memory_space<vmem>>, %arg8: memref<8x128xf32, #tpu.memory_space<vmem>>, %arg9: memref<8x128xf32, #tpu.memory_space<vmem>>) attributes {dimension_semantics = [#tpu.dimension_semantics<parallel>], iteration_bounds = array<i64: 1>, scalar_prefetch = 0 : i64, scratch_operands = 0 : i64, tpu.core_type = #tpu.core_type<tc>, window_params = [{transform_indices = @transform_0, window_bounds = array<i64: 8, 128>}, {transform_indices = @transform_1, window_bounds = array<i64: 8, 128>}, {transform_indices = @transform_2, window_bounds = array<i64: 8, 128>}, {transform_indices = @transform_3, window_bounds = array<i64: 8, 128>}, {transform_indices = @transform_4, window_bounds = array<i64: 8, 128>}, {transform_indices = @transform_5, window_bounds = array<i64: 8, 128>}, {transform_indices = @transform_6, window_bounds = array<i64: 8, 128>}, {transform_indices = @transform_7, window_bounds = array<i64: 8, 128>}, {transform_indices = @transform_8, window_bounds = array<i64: 8, 128>}]} {
    %c0 = arith.constant 0 : index
    %c0_0 = arith.constant 0 : index
    %0 = vector.load %arg1[%c0, %c0_0] : memref<8x128xf32, #tpu.memory_space<vmem>>, vector<8x128xf32>
    %c0_1 = arith.constant 0 : index
    %c0_2 = arith.constant 0 : index
    %1 = vector.load %arg2[%c0_1, %c0_2] : memref<8x128xf32, #tpu.memory_space<vmem>>, vector<8x128xf32>
    %c0_3 = arith.constant 0 : index
    %c0_4 = arith.constant 0 : index
    %2 = vector.load %arg3[%c0_3, %c0_4] : memref<8x128xf32, #tpu.memory_space<vmem>>, vector<8x128xf32>
    %c0_5 = arith.constant 0 : index
    %c0_6 = arith.constant 0 : index
    %3 = vector.load %arg4[%c0_5, %c0_6] : memref<8x128xf32, #tpu.memory_space<vmem>>, vector<8x128xf32>
    %c0_7 = arith.constant 0 : index
    %c0_8 = arith.constant 0 : index
    %4 = vector.load %arg5[%c0_7, %c0_8] : memref<8x128xf32, #tpu.memory_space<vmem>>, vector<8x128xf32>
    %c0_9 = arith.constant 0 : index
    %c0_10 = arith.constant 0 : index
    %5 = vector.load %arg6[%c0_9, %c0_10] : memref<8x128xf32, #tpu.memory_space<vmem>>, vector<8x128xf32>
    %c0_11 = arith.constant 0 : index
    %c0_12 = arith.constant 0 : index
    %6 = vector.load %arg7[%c0_11, %c0_12] : memref<8x128xf32, #tpu.memory_space<vmem>>, vector<8x128xf32>
    %c0_13 = arith.constant 0 : index
    %c0_14 = arith.constant 0 : index
    %7 = vector.load %arg8[%c0_13, %c0_14] : memref<8x128xf32, #tpu.memory_space<vmem>>, vector<8x128xf32>
    %cst = arith.constant 5.000000e-01 : f32
    %8 = vector.broadcast %cst : f32 to vector<8x128xf32>
    %9 = arith.mulf %2, %8 : vector<8x128xf32>
    %cst_15 = arith.constant 5.000000e-01 : f32
    %10 = vector.broadcast %cst_15 : f32 to vector<8x128xf32>
    %11 = arith.mulf %3, %10 : vector<8x128xf32>
    %cst_16 = arith.constant 5.000000e-01 : f32
    %12 = vector.broadcast %cst_16 : f32 to vector<8x128xf32>
    %13 = arith.mulf %6, %12 : vector<8x128xf32>
    %cst_17 = arith.constant 5.000000e-01 : f32
    %14 = vector.broadcast %cst_17 : f32 to vector<8x128xf32>
    %15 = arith.mulf %7, %14 : vector<8x128xf32>
    %16 = arith.subf %0, %9 : vector<8x128xf32>
    %17 = arith.addf %0, %9 : vector<8x128xf32>
    %18 = arith.subf %1, %11 : vector<8x128xf32>
    %19 = arith.addf %1, %11 : vector<8x128xf32>
    %20 = arith.subf %4, %13 : vector<8x128xf32>
    %21 = arith.addf %4, %13 : vector<8x128xf32>
    %22 = arith.subf %5, %15 : vector<8x128xf32>
    %23 = arith.addf %5, %15 : vector<8x128xf32>
    %24 = arith.maximumf %16, %20 : vector<8x128xf32>
    %25 = arith.maximumf %18, %22 : vector<8x128xf32>
    %26 = arith.minimumf %17, %21 : vector<8x128xf32>
    %27 = arith.minimumf %19, %23 : vector<8x128xf32>
    %28 = arith.mulf %2, %3 : vector<8x128xf32>
    %29 = arith.mulf %6, %7 : vector<8x128xf32>
    %30 = arith.subf %26, %24 : vector<8x128xf32>
    %cst_18 = arith.constant 0.000000e+00 : f32
    %31 = vector.broadcast %cst_18 : f32 to vector<8x128xf32>
    %32 = arith.maximumf %30, %31 : vector<8x128xf32>
    %33 = arith.subf %27, %25 : vector<8x128xf32>
    %cst_19 = arith.constant 0.000000e+00 : f32
    %34 = vector.broadcast %cst_19 : f32 to vector<8x128xf32>
    %35 = arith.maximumf %33, %34 : vector<8x128xf32>
    %36 = arith.mulf %32, %35 : vector<8x128xf32>
    %37 = arith.addf %28, %29 : vector<8x128xf32>
    %38 = arith.subf %37, %36 : vector<8x128xf32>
    %cst_20 = arith.constant 1.000000e-16 : f32
    %39 = vector.broadcast %cst_20 : f32 to vector<8x128xf32>
    %40 = arith.addf %38, %39 : vector<8x128xf32>
    %41 = arith.divf %36, %40 : vector<8x128xf32>
    %42 = arith.mulf %41, %41 : vector<8x128xf32>
    %cst_21 = arith.constant 1.000000e+00 : f32
    %43 = vector.broadcast %cst_21 : f32 to vector<8x128xf32>
    %44 = arith.subf %43, %42 : vector<8x128xf32>
    %c0_22 = arith.constant 0 : index
    %c0_23 = arith.constant 0 : index
    %45 = vector.load %arg9[%c0_22, %c0_23] : memref<8x128xf32, #tpu.memory_space<vmem>>, vector<8x128xf32>
    tpu.vector_store %arg9[%c0_22, %c0_23], %44 {strides = array<i32>} : memref<8x128xf32, #tpu.memory_space<vmem>>, vector<8x128xf32>,
    return
  }
  func.func @transform_0(%arg0: i32) -> (i32, i32) {
    %c0_i32 = arith.constant 0 : i32
    %c0_i32_0 = arith.constant 0 : i32
    return %arg0, %c0_i32 : i32, i32
  }
  func.func @transform_1(%arg0: i32) -> (i32, i32) {
    %c0_i32 = arith.constant 0 : i32
    %c0_i32_0 = arith.constant 0 : i32
    return %arg0, %c0_i32 : i32, i32
  }
  func.func @transform_2(%arg0: i32) -> (i32, i32) {
    %c0_i32 = arith.constant 0 : i32
    %c0_i32_0 = arith.constant 0 : i32
    return %arg0, %c0_i32 : i32, i32
  }
  func.func @transform_3(%arg0: i32) -> (i32, i32) {
    %c0_i32 = arith.constant 0 : i32
    %c0_i32_0 = arith.constant 0 : i32
    return %arg0, %c0_i32 : i32, i32
  }
  func.func @transform_4(%arg0: i32) -> (i32, i32) {
    %c0_i32 = arith.constant 0 : i32
    %c0_i32_0 = arith.constant 0 : i32
    return %arg0, %c0_i32 : i32, i32
  }
  func.func @transform_5(%arg0: i32) -> (i32, i32) {
    %c0_i32 = arith.constant 0 : i32
    %c0_i32_0 = arith.constant 0 : i32
    return %arg0, %c0_i32 : i32, i32
  }
  func.func @transform_6(%arg0: i32) -> (i32, i32) {
    %c0_i32 = arith.constant 0 : i32
    %c0_i32_0 = arith.constant 0 : i32
    return %arg0, %c0_i32 : i32, i32
  }
  func.func @transform_7(%arg0: i32) -> (i32, i32) {
    %c0_i32 = arith.constant 0 : i32
    %c0_i32_0 = arith.constant 0 : i32
    return %arg0, %c0_i32 : i32, i32
  }
  func.func @transform_8(%arg0: i32) -> (i32, i32) {
    %c0_i32 = arith.constant 0 : i32
    %c0_i32_0 = arith.constant 0 : i32
    return %arg0, %c0_i32 : i32, i32
  }
}

</mosaic_0001>

<bundles_post_ra>
// kernel: tpu_custom_call.1
= control target key start
LH: loop header
LB: loop body
LE: loop exit
PB: predicated region body
PF: predicated region fallthrough
CT: control target
= control target key end

     0   :  { %13 = vsyncpa [#allocation3], 0  ;;  %s532_s0 = inlined_call_operand.hbm [shape: f32[8,128], index: 0, kind: input, shape index: {}]   ;;  %s533_s1 = inlined_call_operand.hbm [shape: f32[8,128], index: 1, kind: input, shape index: {}]   ;;  %s534_s2 = inlined_call_operand.hbm [shape: f32[8,128], index: 2, kind: input, shape index: {}]   ;;  %s535_s3 = inlined_call_operand.hbm [shape: f32[8,128], index: 3, kind: input, shape index: {}]   ;;  %s536_s4 = inlined_call_operand.hbm [shape: f32[8,128], index: 4, kind: input, shape index: {}]   ;;  %s537_s5 = inlined_call_operand.hbm [shape: f32[8,128], index: 5, kind: input, shape index: {}]   ;;  %s538_s6 = inlined_call_operand.hbm [shape: f32[8,128], index: 6, kind: input, shape index: {}]   ;;  %s539_s7 = inlined_call_operand.hbm [shape: f32[8,128], index: 7, kind: input, shape index: {}]   ;;  %s540_s8 = inlined_call_operand.hbm [shape: f32[8,128], index: 8, kind: output, shape index: {}]  }
   0x1   :  { %14 = vsyncpa [#allocation6], 0 }
   0x2   :  { %15 = vsyncpa [#allocation9], 0 }
   0x3   :  { %16 = vsyncpa [#allocation12], 0 }
   0x4   :  { %17 = vsyncpa [#allocation15], 0  ;;  %s35_s29 = sshll.u32 %s533_s1, 4  ;;  %s36_s29 = int_to_ptr.hbm [resolvable:$true] %s35_s29 }
   0x5   :  { %18 = vsyncpa [#allocation4], 0  ;;  %s451_s30 = smov [#allocation5]   ;;  %s57_s12 = sshll.u32 %s535_s3, 4  ;;  %s58_s12 = int_to_ptr.hbm [resolvable:$true] %s57_s12 }
   0x6   :  { %s37_s9 = sshll.u32 %s451_s30, 4  ;;  %s452_s13 = smov [#allocation8]   ;;  %s38_s9 = int_to_ptr.vmem [resolvable:$true] %s37_s9 }
   0x7   :  { %40 = dma.hbm_to_vmem [thread:$0]  %s36_s29, 128, %s38_s9, [#allocation6]  }
   0x8   :  { %s59_s14 = sshll.u32 %s452_s13, 4  ;;  %s79_s17 = sshll.u32 %s537_s5, 4  ;;  %s60_s14 = int_to_ptr.vmem [resolvable:$true] %s59_s14  ;;  %s80_s17 = int_to_ptr.hbm [resolvable:$true] %s79_s17 }
   0x9   :  { %62 = dma.hbm_to_vmem [thread:$0]  %s58_s12, 128, %s60_s14, [#allocation9]  }
   0xa   :  { %s24_s19 = sshll.u32 %s532_s0, 4  ;;  %s453_s20 = smov [#allocation11]   ;;  %s25_s19 = int_to_ptr.hbm [resolvable:$true] %s24_s19 }
   0xb   :  { %s81_s21 = sshll.u32 %s453_s20, 4  ;;  %s454_s3 = smov [#allocation2]   ;;  %s82_s21 = int_to_ptr.vmem [resolvable:$true] %s81_s21 }
   0xc   :  { %84 = dma.hbm_to_vmem [thread:$0]  %s80_s17, 128, %s82_s21, [#allocation12]  }
   0xd   :  { %s26_s22 = sshll.u32 %s454_s3, 4  ;;  %s46_s25 = sshll.u32 %s534_s2, 4  ;;  %s27_s22 = int_to_ptr.vmem [resolvable:$true] %s26_s22  ;;  %s47_s25 = int_to_ptr.hbm [resolvable:$true] %s46_s25 }
   0xe   :  { %29 = dma.hbm_to_vmem [thread:$0]  %s25_s19, 128, %s27_s22, [#allocation3]  }
   0xf   :  { %s68_s27 = sshll.u32 %s536_s4, 4  ;;  %s455_s28 = smov [#allocation7]   ;;  %s69_s27 = int_to_ptr.hbm [resolvable:$true] %s68_s27 }
  0x10   :  { %s48_s0 = sshll.u32 %s455_s28, 4  ;;  %s456_s29 = smov [#allocation10]   ;;  %s49_s0 = int_to_ptr.vmem [resolvable:$true] %s48_s0 }
  0x11   :  { %51 = dma.hbm_to_vmem [thread:$0]  %s47_s25, 128, %s49_s0, [#allocation6]  }
  0x12   :  { %s70_s30 = sshll.u32 %s456_s29, 4  ;;  %s90_s11 = sshll.u32 %s538_s6, 4  ;;  %s71_s30 = int_to_ptr.vmem [resolvable:$true] %s70_s30  ;;  %s91_s11 = int_to_ptr.hbm [resolvable:$true] %s90_s11 }
  0x13   :  { %73 = dma.hbm_to_vmem [thread:$0]  %s69_s27, 128, %s71_s30, [#allocation9]  }
  0x14   :  { %s101_s13 = sshll.u32 %s539_s7, 4  ;;  %s457_s14 = smov [#allocation13]   ;;  %s102_s13 = int_to_ptr.hbm [resolvable:$true] %s101_s13 }
  0x15   :  { %s92_s4 = sshll.u32 %s457_s14, 4  ;;  %s458_s15 = smov [#allocation14]   ;;  %s93_s4 = int_to_ptr.vmem [resolvable:$true] %s92_s4 }
  0x16   :  { %95 = dma.hbm_to_vmem [thread:$0]  %s91_s11, 128, %s93_s4, [#allocation12]  }
  0x17   :  { %s103_s16 = sshll.u32 %s458_s15, 4  ;;  %s104_s16 = int_to_ptr.vmem [resolvable:$true] %s103_s16 }
  0x18   :  { %106 = dma.hbm_to_vmem [thread:$0]  %s102_s13, 128, %s104_s16, [#allocation15]  }
  0x19   :  { %439 = dma.done.wait [#allocation3], 128  }
  0x1a   :  { %440 = vsyncadd [#allocation3], 4294967168 }
  0x1b   :  { %441 = dma.done.wait [#allocation6], 256  }
  0x1c   :  { %442 = vsyncadd [#allocation6], 4294967040 }
  0x1d   :  { %443 = dma.done.wait [#allocation9], 256  }
  0x1e   :  { %444 = vsyncadd [#allocation9], 4294967040 }
  0x1f   :  { %445 = dma.done.wait [#allocation12], 256  }
  0x20   :  { %446 = vsyncadd [#allocation12], 4294967040 }
  0x21   :  { %447 = dma.done.wait [#allocation15], 128  }
  0x22   :  { %448 = vsyncadd [#allocation15], 4294967168  ;;  %v139_v0 = vld [vmem:[#allocation2] sm:$0xff]  ;;  %v141_v1 = vld [vmem:[#allocation7] sm:$0xff]  ;;  %s459_s6 = smov [#allocation16]   ;;  %s198_s18 = sshll.u32 %s540_s8, 4  ;;  %s199_s18 = int_to_ptr.hbm [resolvable:$true] %s198_s18 }
  0x23   :  { %v140_v2 = vld [vmem:[#allocation5] sm:$0xff]  ;;  %v142_v3 = vld [vmem:[#allocation8] sm:$0xff]  ;;  %v143_v4 = vld [vmem:[#allocation10] sm:$0xff]  ;;  %v147_v5 = vmul.f32 0.5, %v141_v1  ;;  %s196_s7 = sshll.u32 %s459_s6, 4  ;;  %s197_s7 = int_to_ptr.vmem [resolvable:$true] %s196_s7 }
  0x24   :  { %v144_v6 = vld [vmem:[#allocation11] sm:$0xff]  ;;  %v145_v7 = vld [vmem:[#allocation13] sm:$0xff]  ;;  %v146_v8 = vld [vmem:[#allocation14] sm:$0xff]  ;;  %v148_v9 = vmul.f32 0.5, %v142_v3  ;;  %v163_v20 = vmul.f32 %v142_v3, %v141_v1 }
  0x25   :  { %v149_v10 = vmul.f32 0.5, %v145_v7  ;;  %v150_v11 = vmul.f32 0.5, %v146_v8  ;;  %v151_v12 = vsub.f32 %v139_v0, %v147_v5  ;;  %v152_v13 = vadd.f32 %v147_v5, %v139_v0 }
  0x26   :  { %v153_v14 = vsub.f32 %v140_v2, %v148_v9  ;;  %v154_v15 = vadd.f32 %v148_v9, %v140_v2  ;;  %v164_v21 = vmul.f32 %v146_v8, %v145_v7 }
  0x27   :  { %v155_v16 = vsub.f32 %v143_v4, %v149_v10  ;;  %v156_v17 = vadd.f32 %v149_v10, %v143_v4  ;;  %v157_v18 = vsub.f32 %v144_v6, %v150_v11  ;;  %v158_v19 = vadd.f32 %v150_v11, %v144_v6 }
  0x28   :  { %v170_v30 = vadd.f32 %v164_v21, %v163_v20 }
  0x29   :  { %v159_v22 = vmax.f32 %v151_v12, %v155_v16  ;;  %v160_v23 = vmax.f32 %v153_v14, %v157_v18  ;;  %v161_v24 = vmin.f32 %v152_v13, %v156_v17  ;;  %v162_v25 = vmin.f32 %v154_v15, %v158_v19 }
  0x2b   :  { %v165_v26 = vsub.f32 %v161_v24, %v159_v22  ;;  %v167_v27 = vsub.f32 %v162_v25, %v160_v23 }
  0x2d   :  { %v166_v28 = vmax.f32 %v165_v26, 0.0  ;;  %v168_v29 = vmax.f32 %v167_v27, 0.0 }
  0x2f   :  { %v169_v31 = vmul.f32 %v168_v29, %v166_v28 }
  0x31   :  { %v171_v32 = vsub.f32 %v170_v30, %v169_v31 }
  0x33   :  { %v172_v33 = vadd.f32 1e-16, %v171_v32 }
  0x35   :  { %221 = vrcp.f32 %v172_v33  ;;  %v184_v36 = vand.u32 2147483648, %v172_v33  ;;  %vm178_vm0 = vweird.f32 %v172_v33  ;;  %v182_v38 = vand.u32 2147483647, %v172_v33 }
  0x37   :  { %v185_v40 = vor.u32 1.1754944e-38, %v184_v36  ;;  %vm183_vm3 = vcmp.eq.f32.partialorder %v182_v38, 8.507059e+37 }
  0x3b   :  { %v222_v34 = vpop.eup %221 }
  0x3c   :  { %v174_v35 = vmul.f32 %v222_v34, %v172_v33  ;;  %vm179_vm1 = vweird.f32 %v222_v34 }
  0x3d   :  { %vm180_vm2 = vmor %vm178_vm0, %vm179_vm1 }
  0x3e   :  { %v175_v37 = vsub.f32 1.0, %v174_v35 }
  0x40   :  { %v176_v39 = vmul.f32 %v222_v34, %v175_v37 }
  0x42   :  { %v177_v41 = vadd.f32 %v222_v34, %v176_v39 }
  0x44   :  { %v181_v42 = vsel %vm180_vm2, %v222_v34, %v177_v41 }
  0x45   :  { %v186_v43 = vsel %vm183_vm3, %v185_v40, %v181_v42 }
  0x46   :  { %v187_v44 = vmul.f32 %v186_v43, %v169_v31 }
  0x48   :  { %v188_v45 = vmul.f32 %v187_v44, %v187_v44 }
  0x4a   :  { %v189_v46 = vsub.f32 1.0, %v188_v45 }
  0x4c   :  { %190 = vst [vmem:[#allocation16] sm:$0xff] %v189_v46 }
  0x4d   :  { %201 = dma.vmem_to_hbm [thread:$0]  %s197_s7, 128, %s199_s18, [#allocation4]  }
  0x4e   :  { %449 = dma.done.wait [#allocation4], 128  }
  0x4f   :  { %450 = vsyncadd [#allocation4], 4294967168 }
  0x50   :  { %206 = vsyncpa [#allocation3], 1 }
  0x51   :  { %207 = vsyncpa [#allocation6], 1 }
  0x52   :  { %208 = vsyncpa [#allocation9], 1 }
  0x53   :  { %209 = vsyncpa [#allocation12], 1 }
  0x54   :  { %210 = vsyncpa [#allocation15], 1 }
  0x55   :  { %211 = vsyncpa [#allocation4], 1 }

</bundles_post_ra>
